<compile_context>
chip_gen: v7x
topology: tpu7x:2x2x1
jax: 0.10.0
libtpu: 0.0.40
codegen_flags: <defaults>
</compile_context>

<pallas_src>
import functools

import jax
import jax.numpy as jnp
from jax.experimental import pallas as pl
from jax.experimental.pallas import tpu as pltpu

_LANE = 128
_SUBLANE = 8


def _round_up(n, m):
    return ((n + m - 1) // m) * m


# ----------------------------------------------------------------------------
# Fused kernel
# ----------------------------------------------------------------------------
def _fused_tcn_kernel(*refs, n_layers, K, dilations, has_ds, t_last):
    """All TemporalBlocks + linear decoder, one batch element per grid step.

    refs layout:
      [x] + n_layers * [w1, b1, w2, b2, wds, bds] + [dec_w, dec_b]
      + outputs [tcn_out, dec_out]
    """
    x_ref = refs[0]
    lrefs = refs[1:1 + 6 * n_layers]
    dec_w_ref, dec_b_ref = refs[1 + 6 * n_layers:3 + 6 * n_layers]
    out_ref, dec_ref = refs[3 + 6 * n_layers:]

    def causal_conv(h, w_ref, b_ref, d):
        # y[t] = sum_j x[t - j*d] @ W_j  with x[<0] = 0 (causal, dilated).
        # Taps are built with roll(+j*d) along the time/sublane axis and a
        # row mask, then packed lane-wise for a single MXU matmul.
        tq, c = h.shape
        taps = [h]
        for j in range(1, K):
            s = j * d
            rolled = pltpu.roll(h, shift=s, axis=0)
            row = jax.lax.broadcasted_iota(jnp.int32, (tq, c), 0)
            taps.append(jnp.where(row >= s, rolled, 0.0))
        lhs = jnp.concatenate(taps, axis=-1).astype(jnp.bfloat16)   # (T, K*C)
        acc = jnp.dot(lhs, w_ref[...], preferred_element_type=jnp.float32)
        return acc + b_ref[...]

    h = x_ref[0]                                   # (Tp, Cp_in), f32
    for l in range(n_layers):
        w1, b1, w2, b2, wds, bds = lrefs[6 * l:6 * l + 6]
        d = dilations[l]
        h1 = jnp.maximum(causal_conv(h, w1, b1, d), 0.0)
        # TODO(synk): nn.Dropout is identity here (inference semantics).
        h2 = jnp.maximum(causal_conv(h1, w2, b2, d), 0.0)
        if has_ds[l]:
            res = jnp.dot(h.astype(jnp.bfloat16), wds[...],
                          preferred_element_type=jnp.float32) + bds[...]
        else:
            res = h
        h = jnp.maximum(h2 + res, 0.0)

    out_ref[0] = h                                 # (Tp, Cp_last), f32

    # Linear decoder on the last real timestep (fused; output padded to 128).
    last = h[t_last - 1:t_last, :].astype(jnp.bfloat16)   # (1, Cp_last)
    dec_ref[0] = (jnp.dot(last, dec_w_ref[...],
                          preferred_element_type=jnp.float32) + dec_b_ref[...])


# ----------------------------------------------------------------------------
# Wrapper
# ----------------------------------------------------------------------------
def tcn_forward(x, params):
    """x: (B, num_inputs, T) PyTorch NCL layout.

    Returns:
      y:   (B, num_channels[-1], T)  — TemporalConvNet output (matches spec)
      dec: (B, 1)                    — linear decoder on the last timestep
    """
    K = params["kernel_size"]
    layers = params["layers"]
    n_layers = len(layers)
    B, c_in, T = x.shape
    c_last = params["channels"][-1]
    cp_in = _round_up(c_in, _LANE)
    cp_last = layers[-1]["b2"].shape[-1]
    tp = _round_up(T, _SUBLANE)

    # channels-last, zero-padded to lane-dense / sublane-aligned shapes.
    h = jnp.transpose(x, (0, 2, 1)).astype(jnp.float32)        # (B, T, c_in)
    h = jnp.pad(h, ((0, 0), (0, tp - T), (0, cp_in - c_in)))   # (B, Tp, Cp_in)

    dilations = tuple(2 ** i for i in range(n_layers))
    has_ds = tuple(bool(l["has_ds"]) for l in layers)

    kernel = functools.partial(_fused_tcn_kernel, n_layers=n_layers, K=K,
                               dilations=dilations, has_ds=has_ds, t_last=T)

    flat_inputs = [h]
    in_specs = [pl.BlockSpec((1, tp, cp_in), lambda b: (b, 0, 0))]
    for layer in layers:
        for name in ("w1", "b1", "w2", "b2", "wds", "bds"):
            arr = layer[name]
            flat_inputs.append(arr)
            in_specs.append(pl.BlockSpec(arr.shape, lambda b: (0, 0)))
    for arr in (params["dec_w"], params["dec_b"]):
        flat_inputs.append(arr)
        in_specs.append(pl.BlockSpec(arr.shape, lambda b: (0, 0)))

    y_pad, dec_pad = pl.pallas_call(
        kernel,
        grid=(B,),
        in_specs=in_specs,
        out_specs=(pl.BlockSpec((1, tp, cp_last), lambda b: (b, 0, 0)),
                   pl.BlockSpec((1, 1, _LANE), lambda b: (b, 0, 0))),
        out_shape=(jax.ShapeDtypeStruct((B, tp, cp_last), jnp.float32),
                   jax.ShapeDtypeStruct((B, 1, _LANE), jnp.float32)),
        compiler_params=pltpu.CompilerParams(
            dimension_semantics=("parallel",)),
    )(*flat_inputs)

    y = jnp.transpose(y_pad[:, :T, :c_last], (0, 2, 1))        # (B, c_last, T)
    dec = dec_pad[:, 0, :1]                                    # (B, 1)
    return y, dec


# ----------------------------------------------------------------------------
# Parameter construction (weight-norm + repacking glue, plain JAX)
# ----------------------------------------------------------------------------
def _weight_norm(v, g, axes):
    # PyTorch weight_norm (dim=0): w = g * v / ||v||, norm over non-output dims
    norm = jnp.sqrt(jnp.sum(v * v, axis=axes, keepdims=True))
    return g * v / jnp.maximum(norm, 1e-12)


def _pack_conv(w, K, c_in, c_out, cp_in, cp_out):
    """(c_out, c_in, 1, K) conv weight -> delay-major packed (K*cp_in, cp_out).

    Row j*cp_in + i holds w[o, i, 0, K-1-j] (delay j = j*dilation timesteps),
    zero-padded so a single (T, K*cp_in) x (K*cp_in, cp_out) matmul computes
    the causal dilated conv.
    """
    w = w[:, :, 0, ::-1]                                        # (c_out, c_in, K)
    w = jnp.pad(w, ((0, cp_out - c_out), (0, cp_in - c_in), (0, 0)))
    return jnp.transpose(w, (2, 1, 0)).reshape(K * cp_in, cp_out).astype(
        jnp.bfloat16)


def init_params(key, num_channels, *, kernel_size=2, num_inputs=100):
    K = kernel_size
    layers = []
    c_prev = num_inputs
    for c_out in num_channels:
        c_in = c_prev
        cp_in = _round_up(c_in, _LANE)
        cp_out = _round_up(c_out, _LANE)
        key, k1, k2, k3, k4, k5, k6 = jax.random.split(key, 7)
        v1 = 0.01 * jax.random.normal(k1, (c_out, c_in, 1, K), jnp.float32)
        g1 = jnp.sqrt(jnp.sum(v1 * v1, axis=(1, 2, 3), keepdims=True))
        b1 = 0.01 * jax.random.normal(k2, (c_out,), jnp.float32)
        v2 = 0.01 * jax.random.normal(k3, (c_out, c_out, 1, K), jnp.float32)
        g2 = jnp.sqrt(jnp.sum(v2 * v2, axis=(1, 2, 3), keepdims=True))
        b2 = 0.01 * jax.random.normal(k4, (c_out,), jnp.float32)
        w1 = _weight_norm(v1, g1, (1, 2, 3))
        w2 = _weight_norm(v2, g2, (1, 2, 3))
        has_ds = c_in != c_out
        if has_ds:
            wds = 0.01 * jax.random.normal(k5, (c_out, c_in, 1), jnp.float32)
            bds = 0.01 * jax.random.normal(k6, (c_out,), jnp.float32)
            wds_p = jnp.pad(jnp.transpose(wds[:, :, 0], (1, 0)),
                            ((0, cp_in - c_in), (0, cp_out - c_out))
                            ).astype(jnp.bfloat16)
            bds_p = jnp.pad(bds, (0, cp_out - c_out)).reshape(1, cp_out)
        else:
            wds_p = jnp.zeros((cp_in, cp_out), jnp.bfloat16)     # unused
            bds_p = jnp.zeros((1, cp_out), jnp.float32)          # unused
        layers.append(dict(
            w1=_pack_conv(w1, K, c_in, c_out, cp_in, cp_out),
            b1=jnp.pad(b1, (0, cp_out - c_out)).reshape(1, cp_out),
            w2=_pack_conv(w2, K, c_out, c_out, cp_out, cp_out),
            b2=jnp.pad(b2, (0, cp_out - c_out)).reshape(1, cp_out),
            wds=wds_p, bds=bds_p, has_ds=has_ds))
        c_prev = c_out

    key, k7, k8 = jax.random.split(key, 3)
    cp_last = _round_up(c_prev, _LANE)
    dec_w = 0.01 * jax.random.normal(k7, (c_prev, 1), jnp.float32)
    dec_b = 0.01 * jax.random.normal(k8, (1,), jnp.float32)
    dec_wp = jnp.pad(dec_w, ((0, cp_last - c_prev), (0, _LANE - 1))
                     ).astype(jnp.bfloat16)
    dec_bp = jnp.pad(dec_b, (0, _LANE - 1)).reshape(1, _LANE)
    return dict(layers=layers, dec_w=dec_wp, dec_b=dec_bp,
                kernel_size=K, num_inputs=num_inputs,
                channels=tuple(num_channels))


if __name__ == "__main__":
    key = jax.random.PRNGKey(0)
    num_channels = [32, 32]          # two TemporalBlocks (dilations 1, 2)
    kernel_size = 2
    B, C_IN, T = 2, 100, 8           # TCN in the source file uses 100 inputs

    pkey, xkey = jax.random.split(key)
    params = init_params(pkey, num_channels, kernel_size=kernel_size,
                         num_inputs=C_IN)
    x = jax.random.normal(xkey, (B, C_IN, T), jnp.float32)

    y, dec = tcn_forward(x, params)
    jax.block_until_ready((y, dec))
    assert y.shape == (B, num_channels[-1], T), y.shape
    assert dec.shape == (B, 1), dec.shape
    print("KERNEL_OK")
</pallas_src>

<mosaic_0001>
module attributes {stable_mosaic.version = 11 : i64} {
  func.func @_fused_tcn_kernel(%arg0: i32, %arg1: memref<1x8x128xf32, #tpu.memory_space<vmem>>, %arg2: memref<256x128xbf16, #tpu.memory_space<vmem>>, %arg3: memref<1x128xf32, #tpu.memory_space<vmem>>, %arg4: memref<256x128xbf16, #tpu.memory_space<vmem>>, %arg5: memref<1x128xf32, #tpu.memory_space<vmem>>, %arg6: memref<128x128xbf16, #tpu.memory_space<vmem>>, %arg7: memref<1x128xf32, #tpu.memory_space<vmem>>, %arg8: memref<256x128xbf16, #tpu.memory_space<vmem>>, %arg9: memref<1x128xf32, #tpu.memory_space<vmem>>, %arg10: memref<256x128xbf16, #tpu.memory_space<vmem>>, %arg11: memref<1x128xf32, #tpu.memory_space<vmem>>, %arg12: memref<128x128xbf16, #tpu.memory_space<vmem>>, %arg13: memref<1x128xf32, #tpu.memory_space<vmem>>, %arg14: memref<128x128xbf16, #tpu.memory_space<vmem>>, %arg15: memref<1x128xf32, #tpu.memory_space<vmem>>, %arg16: memref<1x8x128xf32, #tpu.memory_space<vmem>>, %arg17: memref<1x1x128xf32, #tpu.memory_space<vmem>>) attributes {dimension_semantics = [#tpu.dimension_semantics<parallel>], iteration_bounds = array<i64: 2>, scalar_prefetch = 0 : i64, scratch_operands = 0 : i64, tpu.core_type = #tpu.core_type<tc>, window_params = [{transform_indices = @transform_0, window_bounds = array<i64: 1, 8, 128>}, {pipeline_mode = #tpu.pipeline_mode<synchronous>, transform_indices = @transform_1, window_bounds = array<i64: 256, 128>}, {pipeline_mode = #tpu.pipeline_mode<synchronous>, transform_indices = @transform_2, window_bounds = array<i64: 1, 128>}, {pipeline_mode = #tpu.pipeline_mode<synchronous>, transform_indices = @transform_3, window_bounds = array<i64: 256, 128>}, {pipeline_mode = #tpu.pipeline_mode<synchronous>, transform_indices = @transform_4, window_bounds = array<i64: 1, 128>}, {pipeline_mode = #tpu.pipeline_mode<synchronous>, transform_indices = @transform_5, window_bounds = array<i64: 128, 128>}, {pipeline_mode = #tpu.pipeline_mode<synchronous>, transform_indices = @transform_6, window_bounds = array<i64: 1, 128>}, {pipeline_mode = #tpu.pipeline_mode<synchronous>, transform_indices = @transform_7, window_bounds = array<i64: 256, 128>}, {pipeline_mode = #tpu.pipeline_mode<synchronous>, transform_indices = @transform_8, window_bounds = array<i64: 1, 128>}, {pipeline_mode = #tpu.pipeline_mode<synchronous>, transform_indices = @transform_9, window_bounds = array<i64: 256, 128>}, {pipeline_mode = #tpu.pipeline_mode<synchronous>, transform_indices = @transform_10, window_bounds = array<i64: 1, 128>}, {pipeline_mode = #tpu.pipeline_mode<synchronous>, transform_indices = @transform_11, window_bounds = array<i64: 128, 128>}, {pipeline_mode = #tpu.pipeline_mode<synchronous>, transform_indices = @transform_12, window_bounds = array<i64: 1, 128>}, {pipeline_mode = #tpu.pipeline_mode<synchronous>, transform_indices = @transform_13, window_bounds = array<i64: 128, 128>}, {pipeline_mode = #tpu.pipeline_mode<synchronous>, transform_indices = @transform_14, window_bounds = array<i64: 1, 128>}, {transform_indices = @transform_15, window_bounds = array<i64: 1, 8, 128>}, {transform_indices = @transform_16, window_bounds = array<i64: 1, 1, 128>}]} {
    %c0 = arith.constant 0 : index
    %c0_0 = arith.constant 0 : index
    %c0_1 = arith.constant 0 : index
    %0 = vector.load %arg1[%c0, %c0_0, %c0_1] : memref<1x8x128xf32, #tpu.memory_space<vmem>>, vector<1x8x128xf32>
    %1 = vector.shape_cast %0 : vector<1x8x128xf32> to vector<8x128xf32>
    %c1_i32 = arith.constant 1 : i32
    %2 = tpu.dynamic_rotate %1 by %c1_i32 dim 0 : vector<8x128xf32>, i32 -> vector<8x128xf32>
    %3 = tpu.iota {dimensions = array<i32: 0>} : vector<8x128xi32>
    %c1_i32_2 = arith.constant 1 : i32
    %4 = vector.broadcast %c1_i32_2 : i32 to vector<8x128xi32>
    %5 = arith.cmpi sge, %3, %4 : vector<8x128xi32>
    %cst = arith.constant 0.000000e+00 : f32
    %6 = vector.broadcast %cst : f32 to vector<8x128xf32>
    %7 = arith.select %5, %2, %6 : vector<8x128xi1>, vector<8x128xf32>
    %8 = tpu.concatenate %1, %7 in 1 : vector<8x128xf32>, vector<8x128xf32> -> vector<8x256xf32>
    %9 = arith.truncf %8 : vector<8x256xf32> to vector<8x256xbf16>
    %c0_3 = arith.constant 0 : index
    %c0_4 = arith.constant 0 : index
    %10 = vector.load %arg2[%c0_3, %c0_4] : memref<256x128xbf16, #tpu.memory_space<vmem>>, vector<256x128xbf16>
    %cst_5 = arith.constant dense<0.000000e+00> : vector<8x128xf32>
    %11 = tpu.matmul %9, %10, %cst_5 {dimension_numbers = #tpu.dot_dimension_numbers<[1], [0], [0], [1], [0, 0, 1, 1], [], []>} : vector<8x256xbf16>, vector<256x128xbf16>, vector<8x128xf32> -> vector<8x128xf32>
    %c0_6 = arith.constant 0 : index
    %c0_7 = arith.constant 0 : index
    %12 = vector.load %arg3[%c0_6, %c0_7] : memref<1x128xf32, #tpu.memory_space<vmem>>, vector<1x128xf32>
    %13 = vector.broadcast %12 : vector<1x128xf32> to vector<8x128xf32>
    %14 = arith.addf %11, %13 : vector<8x128xf32>
    %cst_8 = arith.constant 0.000000e+00 : f32
    %15 = vector.broadcast %cst_8 : f32 to vector<8x128xf32>
    %16 = arith.maximumf %14, %15 : vector<8x128xf32>
    %c1_i32_9 = arith.constant 1 : i32
    %17 = tpu.dynamic_rotate %16 by %c1_i32_9 dim 0 : vector<8x128xf32>, i32 -> vector<8x128xf32>
    %18 = tpu.iota {dimensions = array<i32: 0>} : vector<8x128xi32>
    %c1_i32_10 = arith.constant 1 : i32
    %19 = vector.broadcast %c1_i32_10 : i32 to vector<8x128xi32>
    %20 = arith.cmpi sge, %18, %19 : vector<8x128xi32>
    %cst_11 = arith.constant 0.000000e+00 : f32
    %21 = vector.broadcast %cst_11 : f32 to vector<8x128xf32>
    %22 = arith.select %20, %17, %21 : vector<8x128xi1>, vector<8x128xf32>
    %23 = tpu.concatenate %16, %22 in 1 : vector<8x128xf32>, vector<8x128xf32> -> vector<8x256xf32>
    %24 = arith.truncf %23 : vector<8x256xf32> to vector<8x256xbf16>
    %c0_12 = arith.constant 0 : index
    %c0_13 = arith.constant 0 : index
    %25 = vector.load %arg4[%c0_12, %c0_13] : memref<256x128xbf16, #tpu.memory_space<vmem>>, vector<256x128xbf16>
    %cst_14 = arith.constant dense<0.000000e+00> : vector<8x128xf32>
    %26 = tpu.matmul %24, %25, %cst_14 {dimension_numbers = #tpu.dot_dimension_numbers<[1], [0], [0], [1], [0, 0, 1, 1], [], []>} : vector<8x256xbf16>, vector<256x128xbf16>, vector<8x128xf32> -> vector<8x128xf32>
    %c0_15 = arith.constant 0 : index
    %c0_16 = arith.constant 0 : index
    %27 = vector.load %arg5[%c0_15, %c0_16] : memref<1x128xf32, #tpu.memory_space<vmem>>, vector<1x128xf32>
    %28 = vector.broadcast %27 : vector<1x128xf32> to vector<8x128xf32>
    %29 = arith.addf %26, %28 : vector<8x128xf32>
    %cst_17 = arith.constant 0.000000e+00 : f32
    %30 = vector.broadcast %cst_17 : f32 to vector<8x128xf32>
    %31 = arith.maximumf %29, %30 : vector<8x128xf32>
    %32 = arith.truncf %1 : vector<8x128xf32> to vector<8x128xbf16>
    %c0_18 = arith.constant 0 : index
    %c0_19 = arith.constant 0 : index
    %33 = vector.load %arg6[%c0_18, %c0_19] : memref<128x128xbf16, #tpu.memory_space<vmem>>, vector<128x128xbf16>
    %cst_20 = arith.constant dense<0.000000e+00> : vector<8x128xf32>
    %34 = tpu.matmul %32, %33, %cst_20 {dimension_numbers = #tpu.dot_dimension_numbers<[1], [0], [0], [1], [0, 0, 1, 1], [], []>} : vector<8x128xbf16>, vector<128x128xbf16>, vector<8x128xf32> -> vector<8x128xf32>
    %c0_21 = arith.constant 0 : index
    %c0_22 = arith.constant 0 : index
    %35 = vector.load %arg7[%c0_21, %c0_22] : memref<1x128xf32, #tpu.memory_space<vmem>>, vector<1x128xf32>
    %36 = vector.broadcast %35 : vector<1x128xf32> to vector<8x128xf32>
    %37 = arith.addf %34, %36 : vector<8x128xf32>
    %38 = arith.addf %31, %37 : vector<8x128xf32>
    %cst_23 = arith.constant 0.000000e+00 : f32
    %39 = vector.broadcast %cst_23 : f32 to vector<8x128xf32>
    %40 = arith.maximumf %38, %39 : vector<8x128xf32>
    %c2_i32 = arith.constant 2 : i32
    %41 = tpu.dynamic_rotate %40 by %c2_i32 dim 0 : vector<8x128xf32>, i32 -> vector<8x128xf32>
    %42 = tpu.iota {dimensions = array<i32: 0>} : vector<8x128xi32>
    %c2_i32_24 = arith.constant 2 : i32
    %43 = vector.broadcast %c2_i32_24 : i32 to vector<8x128xi32>
    %44 = arith.cmpi sge, %42, %43 : vector<8x128xi32>
    %cst_25 = arith.constant 0.000000e+00 : f32
    %45 = vector.broadcast %cst_25 : f32 to vector<8x128xf32>
    %46 = arith.select %44, %41, %45 : vector<8x128xi1>, vector<8x128xf32>
    %47 = tpu.concatenate %40, %46 in 1 : vector<8x128xf32>, vector<8x128xf32> -> vector<8x256xf32>
    %48 = arith.truncf %47 : vector<8x256xf32> to vector<8x256xbf16>
    %c0_26 = arith.constant 0 : index
    %c0_27 = arith.constant 0 : index
    %49 = vector.load %arg8[%c0_26, %c0_27] : memref<256x128xbf16, #tpu.memory_space<vmem>>, vector<256x128xbf16>
    %cst_28 = arith.constant dense<0.000000e+00> : vector<8x128xf32>
    %50 = tpu.matmul %48, %49, %cst_28 {dimension_numbers = #tpu.dot_dimension_numbers<[1], [0], [0], [1], [0, 0, 1, 1], [], []>} : vector<8x256xbf16>, vector<256x128xbf16>, vector<8x128xf32> -> vector<8x128xf32>
    %c0_29 = arith.constant 0 : index
    %c0_30 = arith.constant 0 : index
    %51 = vector.load %arg9[%c0_29, %c0_30] : memref<1x128xf32, #tpu.memory_space<vmem>>, vector<1x128xf32>
    %52 = vector.broadcast %51 : vector<1x128xf32> to vector<8x128xf32>
    %53 = arith.addf %50, %52 : vector<8x128xf32>
    %cst_31 = arith.constant 0.000000e+00 : f32
    %54 = vector.broadcast %cst_31 : f32 to vector<8x128xf32>
    %55 = arith.maximumf %53, %54 : vector<8x128xf32>
    %c2_i32_32 = arith.constant 2 : i32
    %56 = tpu.dynamic_rotate %55 by %c2_i32_32 dim 0 : vector<8x128xf32>, i32 -> vector<8x128xf32>
    %57 = tpu.iota {dimensions = array<i32: 0>} : vector<8x128xi32>
    %c2_i32_33 = arith.constant 2 : i32
    %58 = vector.broadcast %c2_i32_33 : i32 to vector<8x128xi32>
    %59 = arith.cmpi sge, %57, %58 : vector<8x128xi32>
    %cst_34 = arith.constant 0.000000e+00 : f32
    %60 = vector.broadcast %cst_34 : f32 to vector<8x128xf32>
    %61 = arith.select %59, %56, %60 : vector<8x128xi1>, vector<8x128xf32>
    %62 = tpu.concatenate %55, %61 in 1 : vector<8x128xf32>, vector<8x128xf32> -> vector<8x256xf32>
    %63 = arith.truncf %62 : vector<8x256xf32> to vector<8x256xbf16>
    %c0_35 = arith.constant 0 : index
    %c0_36 = arith.constant 0 : index
    %64 = vector.load %arg10[%c0_35, %c0_36] : memref<256x128xbf16, #tpu.memory_space<vmem>>, vector<256x128xbf16>
    %cst_37 = arith.constant dense<0.000000e+00> : vector<8x128xf32>
    %65 = tpu.matmul %63, %64, %cst_37 {dimension_numbers = #tpu.dot_dimension_numbers<[1], [0], [0], [1], [0, 0, 1, 1], [], []>} : vector<8x256xbf16>, vector<256x128xbf16>, vector<8x128xf32> -> vector<8x128xf32>
    %c0_38 = arith.constant 0 : index
    %c0_39 = arith.constant 0 : index
    %66 = vector.load %arg11[%c0_38, %c0_39] : memref<1x128xf32, #tpu.memory_space<vmem>>, vector<1x128xf32>
    %67 = vector.broadcast %66 : vector<1x128xf32> to vector<8x128xf32>
    %68 = arith.addf %65, %67 : vector<8x128xf32>
    %cst_40 = arith.constant 0.000000e+00 : f32
    %69 = vector.broadcast %cst_40 : f32 to vector<8x128xf32>
    %70 = arith.maximumf %68, %69 : vector<8x128xf32>
    %71 = arith.addf %70, %40 : vector<8x128xf32>
    %cst_41 = arith.constant 0.000000e+00 : f32
    %72 = vector.broadcast %cst_41 : f32 to vector<8x128xf32>
    %73 = arith.maximumf %71, %72 : vector<8x128xf32>
    %c0_42 = arith.constant 0 : index
    %c0_43 = arith.constant 0 : index
    %c0_44 = arith.constant 0 : index
    %74 = vector.load %arg16[%c0_42, %c0_43, %c0_44] : memref<1x8x128xf32, #tpu.memory_space<vmem>>, vector<1x8x128xf32>
    %75 = vector.shape_cast %74 : vector<1x8x128xf32> to vector<8x128xf32>
    %76 = vector.shape_cast %73 : vector<8x128xf32> to vector<1x8x128xf32>
    tpu.vector_store %arg16[%c0_42, %c0_43, %c0_44], %76 {strides = array<i32>} : memref<1x8x128xf32, #tpu.memory_space<vmem>>, vector<1x8x128xf32>,
    %77 = vector.extract_strided_slice %73 {offsets = [7, 0], sizes = [1, 128], strides = [1, 1]} : vector<8x128xf32> to vector<1x128xf32>
    %78 = arith.truncf %77 : vector<1x128xf32> to vector<1x128xbf16>
    %c0_45 = arith.constant 0 : index
    %c0_46 = arith.constant 0 : index
    %79 = vector.load %arg14[%c0_45, %c0_46] : memref<128x128xbf16, #tpu.memory_space<vmem>>, vector<128x128xbf16>
    %cst_47 = arith.constant dense<0.000000e+00> : vector<1x128xf32>
    %80 = tpu.matmul %78, %79, %cst_47 {dimension_numbers = #tpu.dot_dimension_numbers<[1], [0], [0], [1], [0, 0, 1, 1], [], []>} : vector<1x128xbf16>, vector<128x128xbf16>, vector<1x128xf32> -> vector<1x128xf32>
    %c0_48 = arith.constant 0 : index
    %c0_49 = arith.constant 0 : index
    %81 = vector.load %arg15[%c0_48, %c0_49] : memref<1x128xf32, #tpu.memory_space<vmem>>, vector<1x128xf32>
    %82 = arith.addf %80, %81 : vector<1x128xf32>
    %c0_50 = arith.constant 0 : index
    %c0_51 = arith.constant 0 : index
    %c0_52 = arith.constant 0 : index
    %83 = vector.load %arg17[%c0_50, %c0_51, %c0_52] : memref<1x1x128xf32, #tpu.memory_space<vmem>>, vector<1x1x128xf32>
    %84 = vector.shape_cast %83 : vector<1x1x128xf32> to vector<1x128xf32>
    %85 = vector.shape_cast %82 : vector<1x128xf32> to vector<1x1x128xf32>
    tpu.vector_store %arg17[%c0_50, %c0_51, %c0_52], %85 {strides = array<i32>} : memref<1x1x128xf32, #tpu.memory_space<vmem>>, vector<1x1x128xf32>,
    return
  }
  func.func @transform_0(%arg0: i32) -> (i32, i32, i32) {
    %c0_i32 = arith.constant 0 : i32
    %c0_i32_0 = arith.constant 0 : i32
    %c0_i32_1 = arith.constant 0 : i32
    return %arg0, %c0_i32, %c0_i32_0 : i32, i32, i32
  }
  func.func @transform_1(%arg0: i32) -> (i32, i32) {
    %c0_i32 = arith.constant 0 : i32
    %c0_i32_0 = arith.constant 0 : i32
    %c0_i32_1 = arith.constant 0 : i32
    return %c0_i32, %c0_i32_0 : i32, i32
  }
  func.func @transform_2(%arg0: i32) -> (i32, i32) {
    %c0_i32 = arith.constant 0 : i32
    %c0_i32_0 = arith.constant 0 : i32
    %c0_i32_1 = arith.constant 0 : i32
    return %c0_i32, %c0_i32_0 : i32, i32
  }
  func.func @transform_3(%arg0: i32) -> (i32, i32) {
    %c0_i32 = arith.constant 0 : i32
    %c0_i32_0 = arith.constant 0 : i32
    %c0_i32_1 = arith.constant 0 : i32
    return %c0_i32, %c0_i32_0 : i32, i32
  }
  func.func @transform_4(%arg0: i32) -> (i32, i32) {
    %c0_i32 = arith.constant 0 : i32
    %c0_i32_0 = arith.constant 0 : i32
    %c0_i32_1 = arith.constant 0 : i32
    return %c0_i32, %c0_i32_0 : i32, i32
  }
  func.func @transform_5(%arg0: i32) -> (i32, i32) {
    %c0_i32 = arith.constant 0 : i32
    %c0_i32_0 = arith.constant 0 : i32
    %c0_i32_1 = arith.constant 0 : i32
    return %c0_i32, %c0_i32_0 : i32, i32
  }
  func.func @transform_6(%arg0: i32) -> (i32, i32) {
    %c0_i32 = arith.constant 0 : i32
    %c0_i32_0 = arith.constant 0 : i32
    %c0_i32_1 = arith.constant 0 : i32
    return %c0_i32, %c0_i32_0 : i32, i32
  }
  func.func @transform_7(%arg0: i32) -> (i32, i32) {
    %c0_i32 = arith.constant 0 : i32
    %c0_i32_0 = arith.constant 0 : i32
    %c0_i32_1 = arith.constant 0 : i32
    return %c0_i32, %c0_i32_0 : i32, i32
  }
  func.func @transform_8(%arg0: i32) -> (i32, i32) {
    %c0_i32 = arith.constant 0 : i32
    %c0_i32_0 = arith.constant 0 : i32
    %c0_i32_1 = arith.constant 0 : i32
    return %c0_i32, %c0_i32_0 : i32, i32
  }
  func.func @transform_9(%arg0: i32) -> (i32, i32) {
    %c0_i32 = arith.constant 0 : i32
    %c0_i32_0 = arith.constant 0 : i32
    %c0_i32_1 = arith.constant 0 : i32
    return %c0_i32, %c0_i32_0 : i32, i32
  }
  func.func @transform_10(%arg0: i32) -> (i32, i32) {
    %c0_i32 = arith.constant 0 : i32
    %c0_i32_0 = arith.constant 0 : i32
    %c0_i32_1 = arith.constant 0 : i32
    return %c0_i32, %c0_i32_0 : i32, i32
  }
  func.func @transform_11(%arg0: i32) -> (i32, i32) {
    %c0_i32 = arith.constant 0 : i32
    %c0_i32_0 = arith.constant 0 : i32
    %c0_i32_1 = arith.constant 0 : i32
    return %c0_i32, %c0_i32_0 : i32, i32
  }
  func.func @transform_12(%arg0: i32) -> (i32, i32) {
    %c0_i32 = arith.constant 0 : i32
    %c0_i32_0 = arith.constant 0 : i32
    %c0_i32_1 = arith.constant 0 : i32
    return %c0_i32, %c0_i32_0 : i32, i32
  }
  func.func @transform_13(%arg0: i32) -> (i32, i32) {
    %c0_i32 = arith.constant 0 : i32
    %c0_i32_0 = arith.constant 0 : i32
    %c0_i32_1 = arith.constant 0 : i32
    return %c0_i32, %c0_i32_0 : i32, i32
  }
  func.func @transform_14(%arg0: i32) -> (i32, i32) {
    %c0_i32 = arith.constant 0 : i32
    %c0_i32_0 = arith.constant 0 : i32
    %c0_i32_1 = arith.constant 0 : i32
    return %c0_i32, %c0_i32_0 : i32, i32
  }
  func.func @transform_15(%arg0: i32) -> (i32, i32, i32) {
    %c0_i32 = arith.constant 0 : i32
    %c0_i32_0 = arith.constant 0 : i32
    %c0_i32_1 = arith.constant 0 : i32
    return %arg0, %c0_i32, %c0_i32_0 : i32, i32, i32
  }
  func.func @transform_16(%arg0: i32) -> (i32, i32, i32) {
    %c0_i32 = arith.constant 0 : i32
    %c0_i32_0 = arith.constant 0 : i32
    %c0_i32_1 = arith.constant 0 : i32
    return %arg0, %c0_i32, %c0_i32_0 : i32, i32, i32
  }
}

</mosaic_0001>

<bundles_post_ra>
// kernel: tpu_custom_call.1
= control target key start
LH: loop header
LB: loop body
LE: loop exit
PB: predicated region body
PF: predicated region fallthrough
CT: control target
= control target key end

     0   :  { %s3169_s0 = inlined_call_operand.hbm [shape: f32[2,8,128], index: 0, kind: input, shape index: {}]   ;;  %s3170_s1 = inlined_call_operand.hbm [shape: bf16[256,128], index: 1, kind: input, shape index: {}]   ;;  %s3171_s2 = inlined_call_operand.vmem [shape: f32[1,128], index: 2, kind: input, shape index: {}]   ;;  %s3172_s3 = inlined_call_operand.hbm [shape: bf16[256,128], index: 3, kind: input, shape index: {}]   ;;  %s3173_s4 = inlined_call_operand.vmem [shape: f32[1,128], index: 4, kind: input, shape index: {}]   ;;  %s3174_s5 = inlined_call_operand.hbm [shape: bf16[128,128], index: 5, kind: input, shape index: {}]   ;;  %s3175_s6 = inlined_call_operand.vmem [shape: f32[1,128], index: 6, kind: input, shape index: {}]   ;;  %s3176_s7 = inlined_call_operand.hbm [shape: bf16[256,128], index: 7, kind: input, shape index: {}]   ;;  %s3177_s8 = inlined_call_operand.vmem [shape: f32[1,128], index: 8, kind: input, shape index: {}]   ;;  %s3178_s9 = inlined_call_operand.hbm [shape: bf16[256,128], index: 9, kind: input, shape index: {}]   ;;  %s3179_s10 = inlined_call_operand.vmem [shape: f32[1,128], index: 10, kind: input, shape index: {}]   ;;  %s3180_s11 = inlined_call_operand.hbm [shape: bf16[128,128], index: 11, kind: input, shape index: {}]   ;;  %s3181_s12 = inlined_call_operand.vmem [shape: f32[1,128], index: 12, kind: input, shape index: {}]   ;;  %s3182_s13 = inlined_call_operand.hbm [shape: bf16[128,128], index: 13, kind: input, shape index: {}]   ;;  %s3183_s14 = inlined_call_operand.vmem [shape: f32[1,128], index: 14, kind: input, shape index: {}]   ;;  %s3184_s15 = inlined_call_operand.hbm [shape: f32[2,8,128], index: 15, kind: output, shape index: {0}]   ;;  %s3185_s16 = inlined_call_operand.hbm [shape: f32[2,1,128], index: 16, kind: output, shape index: {1}]  }
   0x1   :  { %3192 = sst [smem:[#allocation26_spill]] %s3169_s0 }
   0x2   :  { %3193 = sst [smem:[#allocation27_spill]] %s3170_s1 }
   0x3   :  { %3194 = sst [smem:[#allocation28_spill]] %s3171_s2 }
   0x4   :  { %3195 = sst [smem:[#allocation29_spill]] %s3172_s3 }
   0x5   :  { %3196 = sst [smem:[#allocation30_spill]] %s3175_s6 }
   0x6   :  { %3197 = sst [smem:[#allocation31_spill]] %s3177_s8 }
   0x7   :  { %3198 = sst [smem:[#allocation32_spill]] %s3179_s10 }
   0x8   :  { %3199 = sst [smem:[#allocation33_spill]] %s3183_s14 }
   0x9   :  { %3200 = sst [smem:[#allocation34_spill]] %s3184_s15 }
   0xa   :  { %3201 = sst [smem:[#allocation35_spill]] %s3185_s16 }
   0xb   :  { %22 = vsyncpa [#allocation3], 0 }
   0xc   :  { %24 = vsyncpa [#allocation3 + $0x1], 0 }
   0xd   :  { %25 = vsyncpa [#allocation6], 0 }
   0xe   :  { %26 = vsyncpa [#allocation9], 0 }
   0xf   :  { %27 = vsyncpa [#allocation12], 0 }
  0x10   :  { %28 = vsyncpa [#allocation15], 0 }
  0x11   :  { %29 = vsyncpa [#allocation4], 0 }
  0x12   :  { %31 = vsyncpa [#allocation4 + $0x1], 0 }
  0x13   :  { %32 = vsyncpa [#allocation18], 0 }
  0x14   :  { %34 = vsyncpa [#allocation18 + $0x1], 0  ;;  %s2716_s12 = smov 0   ;;  %s2718_s21 = smov 0  }
  0x15   :  { %s2720_s22 = smov 0   ;;  %s2722_s23 = smov 0  }
  0x16 LB: > { %s2617_s24 = smov [#allocation5]   ;;  %s2737_s26 = sadd.s32 4294967295, %s2615_s23   ;;  %s2615_s23 = sphi %s2722_s23, %s3239_s23   ;;  %s2611_s22 = sphi %s2720_s22, %s3238_s22   ;;  %s2607_s21 = sphi %s2718_s21, %s3237_s21   ;;  %s2603_s12 = sphi %s2716_s12, %s3236_s12  }
  0x17   : > { %s429_s25 = sshll.u32 %s2617_s24, 4  ;;  %p1800_p0 = scmp.ge.s32.totalorder %s2615_s23, 1  ;;  %s2742_s25 = int_to_ptr.vmem [resolvable:$true] %s429_s25 }
  0x18   : > { %p3189_p1 = scmp.eq.s32.totalorder %s2737_s26, 0  ;;  %p417_p2 = scmp.lt.s32.totalorder %s2615_s23, 3 }
  0x19   : > { %s2618_s28 = smov [#allocation8]   ;;  %s2619_s0 = smov [#allocation11]  }
  0x1a   : > { %p2744_p3 = pnand %p1800_p0, %p417_p2  ;;  %s461_s29 = sshll.u32 %s2618_s28, 4  ;;  %s2757_s29 = int_to_ptr.vmem [resolvable:$true] %s461_s29 }
  0x1b   : > { %s493_s17 = sshll.u32 %s2619_s0, 4  ;;  %s3204_s1 = sld [smem:[#allocation27_spill]]  ;;  %s2759_s17 = int_to_ptr.vmem [resolvable:$true] %s493_s17 }
  0x1c   : > { %s3202_s27 = scalar_select %p2744_p3, 1, 0 }
  0x1d   : > { %p2103_p5 = pneg %p2744_p3 }
  0x1f   : > { %p2753_p6 = pnand %p2103_p5, %p3189_p1 }
  0x21   : > { %s2275_s20 = scalar_lea.hbm %s3204_s1, 2048  ;;  %p2769_p8 = pneg %p2753_p6 }
  0x22   : > { %p2276_p7 = scmp.ne.s32.totalorder %s3204_s1, %s2275_s20  ;;  %p2282_p11 = scmp.lt.u32.totalorder %s2275_s20, %s3204_s1 }
  0x24   : > { %p2278_p9 = pnand %p2769_p8, %p2276_p7 }
  0x26   : > { %p2279_p10 = pneg %p2278_p9 }
  0x28   : > { %p2284_p12 = pnand %p2282_p11, %p2279_p10 }
  0x2a   : > { %2287 = shalt.err (!%p2284_p12)
}
  0x2b   : > { %s2288_s16 = scalar_lea.vmem %s2742_s25, 2048  ;;  %p2296_p5 = scmp.lt.s32.totalorder %s2742_s25, %s2742_s25 }
  0x2c   : > { %p2289_p13 = scmp.ne.s32.totalorder %s2742_s25, %s2288_s16  ;;  %p2297_p4 = scmp.lt.s32.totalorder %s2288_s16, %s2288_s16 }
  0x2e   : > { %p2291_p0 = pnand %p2289_p13, %p2769_p8  ;;  %p2298_p7 = por %p2297_p4, %p2296_p5 }
  0x30   : > { %p2292_p2 = pneg %p2291_p0 }
  0x32   : > { %p2299_p9 = pnand %p2298_p7, %p2292_p2 }
  0x34   : > { %2302 = shalt.err (!%p2299_p9)
}
  0x35   : > { %s2620_s18 = smov 64   ;;  %s2621_s14 = smov 4  }
  0x36   : > { %2106 = dma.hbm_to_vmem [thread:$0]  (!%p2753_p6), %s3204_s1, 2048, %s2742_s25, [#allocation6], %s2620_s18, %s2620_s18, %s2621_s14  }
  0x37   : > { %s2303_s16 = scalar_lea.hbm %s3174_s5, 1024 }
  0x38   : > { %p2304_p4 = scmp.ne.s32.totalorder %s3174_s5, %s2303_s16  ;;  %p2310_p12 = scmp.lt.u32.totalorder %s2303_s16, %s3174_s5 }
  0x3a   : > { %p2306_p10 = pnand %p2304_p4, %p2769_p8 }
  0x3c   : > { %p2307_p11 = pneg %p2306_p10 }
  0x3e   : > { %p2312_p13 = pnand %p2310_p12, %p2307_p11 }
  0x40   : > { %2315 = shalt.err (!%p2312_p13)
}
  0x41   : > { %s2316_s25 = scalar_lea.vmem %s2757_s29, 1024  ;;  %p2324_p7 = scmp.lt.s32.totalorder %s2757_s29, %s2757_s29 }
  0x42   : > { %p2317_p0 = scmp.ne.s32.totalorder %s2757_s29, %s2316_s25  ;;  %p2325_p9 = scmp.lt.s32.totalorder %s2316_s25, %s2316_s25 }
  0x44   : > { %p2319_p2 = pnand %p2317_p0, %p2769_p8  ;;  %p2326_p4 = por %p2325_p9, %p2324_p7 }
  0x46   : > { %p2320_p5 = pneg %p2319_p2 }
  0x48   : > { %p2327_p10 = pnand %p2326_p4, %p2320_p5 }
  0x4a   : > { %2330 = shalt.err (!%p2327_p10)
}
  0x4b   : > { %2112 = dma.hbm_to_vmem [thread:$0]  (!%p2753_p6), %s3174_s5, 1024, %s2757_s29, [#allocation9], %s2620_s18, %s2620_s18, %s2621_s14  }
  0x4c   : > { %s2331_s19 = scalar_lea.hbm %s3178_s9, 2048 }
  0x4d   : > { %p2332_p11 = scmp.ne.s32.totalorder %s3178_s9, %s2331_s19  ;;  %p2338_p0 = scmp.lt.u32.totalorder %s2331_s19, %s3178_s9 }
  0x4f   : > { %p2334_p12 = pnand %p2332_p11, %p2769_p8 }
  0x51   : > { %p2335_p13 = pneg %p2334_p12 }
  0x53   : > { %p2340_p2 = pnand %p2338_p0, %p2335_p13 }
  0x55   : > { %2343 = shalt.err (!%p2340_p2)
}
  0x56   : > { %s2344_s29 = scalar_lea.vmem %s2759_s17, 2048  ;;  %p2352_p4 = scmp.lt.s32.totalorder %s2759_s17, %s2759_s17 }
  0x57   : > { %p2345_p5 = scmp.ne.s32.totalorder %s2759_s17, %s2344_s29  ;;  %p2353_p10 = scmp.lt.s32.totalorder %s2344_s29, %s2344_s29 }
  0x59   : > { %p2347_p7 = pnand %p2345_p5, %p2769_p8  ;;  %p2354_p11 = por %p2353_p10, %p2352_p4 }
  0x5b   : > { %p2348_p9 = pneg %p2347_p7 }
  0x5d   : > { %p2355_p12 = pnand %p2354_p11, %p2348_p9 }
  0x5f   : > { %2358 = shalt.err (!%p2355_p12)
}
  0x60   : > { %2118 = dma.hbm_to_vmem [thread:$0]  (!%p2753_p6), %s3178_s9, 2048, %s2759_s17, [#allocation12], %s2620_s18, %s2620_s18, %s2621_s14  }
  0x61   : > { %s2622_s8 = smov [#allocation7]   ;;  %s2623_s15 = smov [#allocation10]  }
  0x62   : > { %s445_s10 = sshll.u32 %s2622_s8, 4  ;;  %s477_s19 = sshll.u32 %s2623_s15, 4  ;;  %s446_s10 = int_to_ptr.vmem [resolvable:$true] %s445_s10  ;;  %s478_s19 = int_to_ptr.vmem [resolvable:$true] %s477_s19 }
  0x63   : > { %s3206_s3 = sld [smem:[#allocation29_spill]] }
  0x69   : > { %s2359_s0 = scalar_lea.hbm %s3206_s3, 2048 }
  0x6a   : > { %p2360_p13 = scmp.ne.s32.totalorder %s3206_s3, %s2359_s0  ;;  %p2366_p5 = scmp.lt.u32.totalorder %s2359_s0, %s3206_s3 }
  0x6c   : > { %p2362_p0 = pnand %p2360_p13, %p2769_p8 }
  0x6e   : > { %p2363_p2 = pneg %p2362_p0 }
  0x70   : > { %p2368_p7 = pnand %p2366_p5, %p2363_p2 }
  0x72   : > { %2371 = shalt.err (!%p2368_p7)
}
  0x73   : > { %s2372_s17 = scalar_lea.vmem %s446_s10, 2048  ;;  %p2380_p11 = scmp.lt.s32.totalorder %s446_s10, %s446_s10 }
  0x74   : > { %p2373_p9 = scmp.ne.s32.totalorder %s446_s10, %s2372_s17  ;;  %p2381_p12 = scmp.lt.s32.totalorder %s2372_s17, %s2372_s17 }
  0x76   : > { %p2375_p4 = pnand %p2373_p9, %p2769_p8  ;;  %p2382_p1 = por %p2381_p12, %p2380_p11 }
  0x78   : > { %p2376_p10 = pneg %p2375_p4 }
  0x7a   : > { %p2383_p3 = pnand %p2382_p1, %p2376_p10 }
  0x7c   : > { %2386 = shalt.err (!%p2383_p3)
}
  0x7d   : > { %2109 = dma.hbm_to_vmem [thread:$0]  (!%p2753_p6), %s3206_s3, 2048, %s446_s10, [#allocation6], %s2620_s18, %s2620_s18, %s2621_s14  }
  0x7e   : > { %s2387_s20 = scalar_lea.hbm %s3176_s7, 2048 }
  0x7f   : > { %p2388_p1 = scmp.ne.s32.totalorder %s3176_s7, %s2387_s20  ;;  %p2394_p0 = scmp.lt.u32.totalorder %s2387_s20, %s3176_s7 }
  0x81   : > { %p2390_p3 = pnand %p2388_p1, %p2769_p8 }
  0x83   : > { %p2391_p13 = pneg %p2390_p3 }
  0x85   : > { %p2396_p2 = pnand %p2394_p0, %p2391_p13 }
  0x87   : > { %2399 = shalt.err (!%p2396_p2)
}
  0x88   : > { %s2400_s25 = scalar_lea.vmem %s478_s19, 2048  ;;  %p2408_p4 = scmp.lt.s32.totalorder %s478_s19, %s478_s19 }
  0x89   : > { %p2401_p5 = scmp.ne.s32.totalorder %s478_s19, %s2400_s25  ;;  %p2409_p10 = scmp.lt.s32.totalorder %s2400_s25, %s2400_s25 }
  0x8b   : > { %p2403_p7 = pnand %p2401_p5, %p2769_p8  ;;  %p2410_p11 = por %p2409_p10, %p2408_p4 }
  0x8d   : > { %p2404_p9 = pneg %p2403_p7 }
  0x8f   : > { %p2411_p12 = pnand %p2410_p11, %p2404_p9 }
  0x91   : > { %2414 = shalt.err (!%p2411_p12)
}
  0x92   : > { %2115 = dma.hbm_to_vmem [thread:$0]  (!%p2753_p6), %s3176_s7, 2048, %s478_s19, [#allocation9], %s2620_s18, %s2620_s18, %s2621_s14  }
  0x93   : > { %s2624_s1 = smov [#allocation13]   ;;  %s2625_s8 = smov [#allocation14]  }
  0x94   : > { %s509_s6 = sshll.u32 %s2624_s1, 4  ;;  %s525_s15 = sshll.u32 %s2625_s8, 4  ;;  %s510_s6 = int_to_ptr.vmem [resolvable:$true] %s509_s6  ;;  %s526_s15 = int_to_ptr.vmem [resolvable:$true] %s525_s15 }
  0x95   : > { %s2415_s0 = scalar_lea.hbm %s3180_s11, 1024 }
  0x96   : > { %p2416_p1 = scmp.ne.s32.totalorder %s3180_s11, %s2415_s0  ;;  %p2422_p0 = scmp.lt.u32.totalorder %s2415_s0, %s3180_s11 }
  0x98   : > { %p2418_p3 = pnand %p2416_p1, %p2769_p8 }
  0x9a   : > { %p2419_p13 = pneg %p2418_p3 }
  0x9c   : > { %p2424_p2 = pnand %p2422_p0, %p2419_p13 }
  0x9e   : > { %2427 = shalt.err (!%p2424_p2)
}
  0x9f   : > { %s2428_s19 = scalar_lea.vmem %s510_s6, 1024  ;;  %p2436_p4 = scmp.lt.s32.totalorder %s510_s6, %s510_s6 }
  0xa0   : > { %p2429_p5 = scmp.ne.s32.totalorder %s510_s6, %s2428_s19  ;;  %p2437_p10 = scmp.lt.s32.totalorder %s2428_s19, %s2428_s19 }
  0xa2   : > { %p2431_p7 = pnand %p2429_p5, %p2769_p8  ;;  %p2438_p11 = por %p2437_p10, %p2436_p4 }
  0xa4   : > { %p2432_p9 = pneg %p2431_p7 }
  0xa6   : > { %p2439_p12 = pnand %p2438_p11, %p2432_p9 }
  0xa8   : > { %2442 = shalt.err (!%p2439_p12)
}
  0xa9   : > { %2121 = dma.hbm_to_vmem [thread:$0]  (!%p2753_p6), %s3180_s11, 1024, %s510_s6, [#allocation12], %s2620_s18, %s2620_s18, %s2621_s14  }
  0xaa   : > { %s2443_s24 = scalar_lea.hbm %s3182_s13, 1024 }
  0xab   : > { %p2444_p1 = scmp.ne.s32.totalorder %s3182_s13, %s2443_s24  ;;  %p2450_p0 = scmp.lt.u32.totalorder %s2443_s24, %s3182_s13 }
  0xad   : > { %p2446_p3 = pnand %p2444_p1, %p2769_p8 }
  0xaf   : > { %p2447_p13 = pneg %p2446_p3 }
  0xb1   : > { %p2452_p2 = pnand %p2450_p0, %p2447_p13 }
  0xb3   : > { %2455 = shalt.err (!%p2452_p2)
}
  0xb4   : > { %s2456_s10 = scalar_lea.vmem %s526_s15, 1024  ;;  %p2464_p4 = scmp.lt.s32.totalorder %s526_s15, %s526_s15 }
  0xb5   : > { %p2457_p5 = scmp.ne.s32.totalorder %s526_s15, %s2456_s10  ;;  %p2465_p10 = scmp.lt.s32.totalorder %s2456_s10, %s2456_s10 }
  0xb7   : > { %p2459_p7 = pnand %p2457_p5, %p2769_p8  ;;  %p2466_p11 = por %p2465_p10, %p2464_p4 }
  0xb9   : > { %p2460_p9 = pneg %p2459_p7 }
  0xbb   : > { %p2467_p12 = pnand %p2466_p11, %p2460_p9 }
  0xbd   : > { %2470 = shalt.err (!%p2467_p12)
}
  0xbe   : > { %2124 = dma.hbm_to_vmem [thread:$0]  (!%p2753_p6), %s3182_s13, 1024, %s526_s15, [#allocation15], %s2620_s18, %s2620_s18, %s2621_s14  }
  0xbf   : > { %s1799_s30 = sadd.s32 4294967294, %s2615_s23   ;;  %s2931_s28 = sadd.s32 1, %s2615_s23  }
  0xc0   : > { %s47_s17 = sadd.s32 1, %s2611_s22  ;;  %s44_s1 = ssub.s32 %s2615_s23, %s2931_s28 }
  0xc1   : > { %p54_p8 = scmp.ne.s32.totalorder %s2611_s22, %s2607_s21  ;;  %p45_p1 = scmp.eq.s32.totalorder %s44_s1, 0 }
  0xc2   : > { %p55_p3 = scmp.eq.s32.totalorder %s2615_s23, 0  ;;  %p60_p13 = scmp.ne.s32.totalorder %s2607_s21, %s2603_s12 }
  0xc3   : > { %p378_p0 = scmp.eq.s32.totalorder %s2737_s26, 1  ;;  %p3207_p5 = scmp.eq.s32.totalorder %s2737_s26, 0 }
  0xc4   : > { %s2943_s8 = scalar_select %p45_p1, %s2611_s22, %s47_s17  }
  0xc5   : > { %p56_p2 = por %p55_p3, %p54_p8  ;;  %p2947_p7 = por %p3207_p5, %p60_p13 }
  0xc6   : > { %p2951_p6 = por %p378_p0, %p54_p8  ;;  %p384_p9 = scmp.eq.s32.totalorder %s1799_s30, 1 }
  0xc7   : > { %p2143_p4 = scmp.lt.s32.totalorder %s2615_s23, 2  ;;  %s542_s14 = sand.u32 1, %s2611_s22  }
  0xc8   : > { %s3209_s18 = scalar_select %p2951_p6, 1, 0 }
  0xc9   : > { %p2957_p10 = por %p384_p9, %p60_p13  ;;  %s1809_s24 = sshll.u32 %s542_s14, 3 }
  0xca   : > { %s1810_s0 = sshll.u32 %s2615_s23, 7  ;;  %s3211_s25 = sld [smem:[#allocation26_spill]] }
  0xcb   : > { %s3210_s15 = scalar_select %p2957_p10, 1, 0 }
  0xcc   : > { %s546_s6 = scalar_lea.vmem [#allocation2], %s1809_s24  ;;  %p2967_p11 = pnand %p2143_p4, %p56_p2 }
  0xcd   : > { %s553_s19 = sshll.u32 %s546_s6, 4  ;;  %s543_s17 = scalar_lea.sflag [#allocation3], %s542_s14  ;;  %s2971_s19 = int_to_ptr.vmem [resolvable:$true] %s553_s19 }
  0xce   : > { %p2473_p8 = pneg %p2967_p11 }
  0xd0   : > { %s2965_s10 = scalar_lea.hbm %s3211_s25, %s1810_s0  ;;  %s2476_s16 = scalar_lea.hbm %s3211_s25, 256 }
  0xd1   : > { %s2471_s1 = scalar_lea.hbm %s2965_s10, 128  ;;  %p2477_p13 = scmp.lt.u32.totalorder %s2965_s10, %s3211_s25 }
  0xd2   : > { %p2472_p12 = scmp.ne.s32.totalorder %s2965_s10, %s2471_s1  ;;  %p2478_p0 = scmp.lt.u32.totalorder %s2476_s16, %s2471_s1 }
  0xd3   : > { %p2480_p5 = scmp.lt.u32.totalorder %s2471_s1, %s2965_s10 }
  0xd4   : > { %p2474_p1 = pnand %p2473_p8, %p2472_p12  ;;  %p2479_p2 = por %p2478_p0, %p2477_p13 }
  0xd6   : > { %p2475_p3 = pneg %p2474_p1  ;;  %p2481_p9 = por %p2480_p5, %p2479_p2 }
  0xd8   : > { %p2482_p4 = pnand %p2481_p9, %p2475_p3 }
  0xda   : > { %2485 = shalt.err (!%p2482_p4)
}
  0xdb   : > { %s2486_s14 = scalar_lea.vmem %s2971_s19, 128  ;;  %s2626_s0 = smov [#allocation2]  }
  0xdc   : > { %p2487_p12 = scmp.ne.s32.totalorder %s2971_s19, %s2486_s14  ;;  %s2491_s24 = sshll.u32 %s2626_s0, 4  ;;  %s2492_s24 = int_to_ptr.vmem [resolvable:$false] %s2491_s24 }
  0xdd   : > { %s2493_s29 = scalar_lea.vmem %s2492_s24, 256  ;;  %p2494_p6 = scmp.lt.s32.totalorder %s2971_s19, %s2492_s24 }
  0xde   : > { %p2489_p1 = pnand %p2487_p12, %p2473_p8  ;;  %p2495_p13 = scmp.lt.s32.totalorder %s2493_s29, %s2486_s14 }
  0xe0   : > { %p2490_p10 = pneg %p2489_p1  ;;  %p2496_p0 = por %p2495_p13, %p2494_p6 }
  0xe2   : > { %p2497_p2 = pnand %p2496_p0, %p2490_p10 }
  0xe4   : > { %2500 = shalt.err (!%p2497_p2)
}
  0xe5   : > { %2128 = dma.hbm_to_vmem [thread:$0]  (!%p2967_p11), %s2965_s10, 128, %s2971_s19, %s543_s17  }
  0xe6   : > { %p3213_p3 = scmp.ne.s32.totalorder %s3202_s27, 0 }
  0xe7   : > { %s3001_s1 = sand.u32 (!%p3213_p3), 1, %s2607_s21  }
  0xe8   : > { %562 = sbr.rel (%p3213_p3) target bundleno = 1418 (0x58a), region = 80  ;;  %s1812_s16 = sshll.u32 (!%p3213_p3), %s3001_s1, 3 }
  0xe9   : > { %s565_s6 = scalar_lea.sflag (!%p3213_p3), [#allocation3], %s3001_s1  ;;  %s3007_s14 = scalar_lea.vmem (!%p3213_p3), [#allocation2], %s1812_s16 }
  0xef   : > { %2574 = dma.done.wait (%p2947_p7), %s565_s6, 128  }
  0xf0   : > { %2576 = vsyncadd (%p2947_p7), %s565_s6, 4294967168  ;;  %p3214_p6 = scmp.eq.s32.totalorder %s2737_s26, 0 }
  0xf2   : > { %2578 = dma.done.wait (%p3214_p6), [#allocation6], 4096   ;;  %p3215_p10 = pmov %p3214_p6 }
  0xf3   : > { %p3216_p11 = pmov %p3214_p6 }
  0xf4   : > { %2580 = vsyncadd (%p3215_p10), [#allocation6], 4294963200 }
  0xf5   : > { %2582 = dma.done.wait (%p3216_p11), [#allocation9], 3072   ;;  %p3217_p8 = pmov %p3214_p6 }
  0xf6   : > { %p3218_p5 = pmov %p3214_p6 }
  0xf7   : > { %2584 = vsyncadd (%p3217_p8), [#allocation9], 4294964224 }
  0xf8   : > { %2586 = dma.done.wait (%p3218_p5), [#allocation12], 3072   ;;  %p3219_p9 = pmov %p3218_p5 }
  0xf9   : > { %p3220_p7 = pmov %p3218_p5 }
  0xfa   : > { %2588 = vsyncadd (%p3219_p9), [#allocation12], 4294964224 }
  0xfb   : > { %2590 = dma.done.wait (%p3220_p7), [#allocation15], 1024   ;;  %p3221_p4 = pmov %p3218_p5 }
  0xfc   : > { %v2195_v0 = vld [vmem:[#allocation5 + $0x40] sm:$0xff]   ;;  %v2197_v2 = vld [vmem:[#allocation5 + $0x48] sm:$0xff]   ;;  %v652_v3 = vlaneseq  ;;  %v2199_v5 = vld [vmem:[#allocation5 + $0x50] sm:$0xff]   ;;  %v2627_v34 = vmov 0.0   ;;  %vm2628_vm2 = vmmov 0   ;;  %s3224_s2 = sld [smem:[#allocation28_spill]] }
  0xfd   : > { %2592 = vsyncadd (%p3221_p4), [#allocation15], 4294966272  ;;  %v2196_v1 = vld [vmem:[#allocation5] sm:$0xff]   ;;  %1923 = vmatprep.subr.bf16.mxu0 %v2195_v0  ;;  %v2198_v4 = vld [vmem:[#allocation5 + $0x8] sm:$0xff]   ;;  %s3225_s0 = sld [smem:[#allocation30_spill]]  ;;  %s3228_s6 = sld [smem:[#allocation31_spill]] }
  0xfe   : > { %1924 = vmatpush3.bf16.msra.mxu0 %v2196_v1  ;;  %v3029_v6 = vshrl.u32 %v652_v3, 7  ;;  %v2200_v7 = vld [vmem:[#allocation5 + $0x10] sm:$0xff]   ;;  %v2201_v8 = vld [vmem:[#allocation5 + $0x58] sm:$0xff]   ;;  %v2203_v10 = vld [vmem:[#allocation5 + $0x60] sm:$0xff]   ;;  %s3229_s20 = sld [smem:[#allocation32_spill]]  ;;  %s642_s10 = scalar_lea.vmem [#allocation16], %s1812_s16 }
  0xff   : > { %1925 = vmatprep.subr.bf16.mxu0 %v2197_v2  ;;  %v2202_v9 = vld [vmem:[#allocation5 + $0x18] sm:$0xff]   ;;  %v2204_v12 = vld [vmem:[#allocation5 + $0x20] sm:$0xff]   ;;  %v2205_v13 = vld [vmem:[#allocation5 + $0x68] sm:$0xff]   ;;  %s1919_s19 = sshll.u32 %s2737_s26, 7  ;;  %s1621_s30 = sshll.u32 %s642_s10, 4  ;;  %s1622_s30 = int_to_ptr.vmem [resolvable:$true] %s1621_s30 }
 0x100   : > { %vm654_vm0 = vcmp.ge.s32.totalorder %v3029_v6, 1  ;;  %v650_v14 = vld [vmem:[%s3007_s14] sm:$0xff]  ;;  %v2206_v15 = vld [vmem:[#allocation5 + $0x28] sm:$0xff]   ;;  %v2211_v17 = vld [vmem:[#allocation7 + $0x40] sm:$0xff]   ;;  %vm1128_vm3 = vcmp.ge.s32.totalorder %v3029_v6, 2  ;;  %s3230_s24 = sld [smem:[#allocation34_spill]] }
 0x101   : > { %vm3032_vm1 = vmpackc.low %vm654_vm0, %vm654_vm0  ;;  %v651_v16 = vrot.slane %v650_v14, 7  ;;  %v2212_v18 = vld [vmem:[#allocation7] sm:$0xff]   ;;  %v2207_v19 = vld [vmem:[#allocation5 + $0x70] sm:$0xff]   ;;  %1945 = vmatprep.subr.bf16.mxu1 %v2211_v17  ;;  %v656_v32 = vpack.c.bf16 %v650_v14, %v650_v14  ;;  %s2501_s14 = scalar_lea.vmem %s1622_s30, 128  ;;  %p3231_p1 = scmp.ne.s32.totalorder %s3209_s18, 0 }
 0x102   : > { %1926 = vmatpush3.bf16.msra.mxu0 %v2198_v4  ;;  %1946 = vmatpush3.bf16.msra.mxu1 %v2212_v18  ;;  %v2214_v21 = vld [vmem:[#allocation7 + $0x48] sm:$0xff]   ;;  %v2208_v22 = vld [vmem:[#allocation5 + $0x30] sm:$0xff]   ;;  %v2209_v24 = vld [vmem:[#allocation5 + $0x78] sm:$0xff]   ;;  %p2502_p12 = scmp.ne.s32.totalorder %s1622_s30, %s2501_s14  ;;  %s2629_s27 = smov [#allocation16]  }
 0x103   : > { %1927 = vmatprep.subr.bf16.mxu0 %v2199_v5  ;;  %v1839_v20 = vpack.c.bf16 %v651_v16, %v651_v16  ;;  %v2215_v23 = vld [vmem:[#allocation7 + $0x8] sm:$0xff]   ;;  %1947 = vmatprep.subr.bf16.mxu1 %v2214_v21  ;;  %v2217_v25 = vld [vmem:[#allocation7 + $0x50] sm:$0xff]   ;;  %v2220_v27 = vld [vmem:[#allocation7 + $0x58] sm:$0xff]   ;;  %s2505_s16 = sshll.u32 %s2629_s27, 4  ;;  %s2506_s16 = int_to_ptr.vmem [resolvable:$false] %s2505_s16 }
 0x104   : > { %v2218_v26 = vld [vmem:[#allocation7 + $0x10] sm:$0xff]   ;;  %v2210_v28 = vld [vmem:[#allocation5 + $0x38] sm:$0xff]   ;;  %v2213_v30 = vld [vmem:[#allocation8] sm:$0xff]   ;;  %p2503_p13 = pnand %p2502_p12, %p3231_p1  ;;  %p2508_p2 = scmp.lt.s32.totalorder %s1622_s30, %s2506_s16 }
 0x105   : > { %1840 = vmatprep.mubr.msk.bf16.mxu0 %vm3032_vm1, %v1839_v20  ;;  %v2221_v29 = vld [vmem:[#allocation7 + $0x18] sm:$0xff]   ;;  %v2223_v31 = vld [vmem:[#allocation7 + $0x60] sm:$0xff]   ;;  %v2216_v35 = vld [vmem:[#allocation8 + $0x8] sm:$0xff]  }
 0x106   : > { %1928 = vmatpush3.bf16.msra.mxu0 %v2200_v7  ;;  %1948 = vmatpush3.bf16.msra.mxu1 %v2215_v23  ;;  %v2224_v33 = vld [vmem:[#allocation7 + $0x20] sm:$0xff]   ;;  %v2219_v36 = vld [vmem:[#allocation8 + $0x10] sm:$0xff]   ;;  %v2222_v37 = vld [vmem:[#allocation8 + $0x18] sm:$0xff]   ;;  %s3097_s29 = scalar_lea.hbm %s3230_s24, %s1919_s19  ;;  %p2504_p0 = pneg %p2503_p13 }
 0x107   : > { %1929 = vmatprep.subr.bf16.mxu0 %v2201_v8  ;;  %1949 = vmatprep.subr.bf16.mxu1 %v2217_v25  ;;  %v2225_v38 = vld [vmem:[#allocation8 + $0x20] sm:$0xff]   ;;  %v2226_v39 = vld [vmem:[#allocation7 + $0x68] sm:$0xff]   ;;  %v2229_v42 = vld [vmem:[#allocation7 + $0x70] sm:$0xff]  }
 0x108   : > { %v2227_v40 = vld [vmem:[#allocation7 + $0x28] sm:$0xff]   ;;  %v2230_v43 = vld [vmem:[#allocation7 + $0x30] sm:$0xff]   ;;  %v2232_v45 = vld [vmem:[#allocation7 + $0x78] sm:$0xff]  }
 0x109   : > { %v2228_v41 = vld [vmem:[#allocation8 + $0x28] sm:$0xff]   ;;  %v2231_v44 = vld [vmem:[#allocation8 + $0x30] sm:$0xff]   ;;  %v2233_v46 = vld [vmem:[#allocation7 + $0x38] sm:$0xff]  }
 0x10a   : > { %1930 = vmatpush3.bf16.msra.mxu0 %v2202_v9  ;;  %1950 = vmatpush3.bf16.msra.mxu1 %v2218_v26  ;;  %v2234_v47 = vld [vmem:[#allocation8 + $0x38] sm:$0xff]   ;;  %v2235_v48 = vld [vmem:[#allocation10 + $0x40] sm:$0xff]   ;;  %v1821_v50 = vld [vmem:[%s3224_s2] ss:$0 sm:$0xff] }
 0x10b   : > { %1931 = vmatprep.subr.bf16.mxu0 %v2203_v10  ;;  %1951 = vmatprep.subr.bf16.mxu1 %v2220_v27  ;;  %v2236_v59 = vld [vmem:[#allocation10] sm:$0xff]   ;;  %v2237_v61 = vld [vmem:[#allocation10 + $0x48] sm:$0xff]   ;;  %v2239_v63 = vld [vmem:[#allocation10 + $0x50] sm:$0xff]  }
 0x10c   : > { %v2238_v62 = vld [vmem:[#allocation10 + $0x8] sm:$0xff]   ;;  %v2240_v0 = vld [vmem:[#allocation10 + $0x10] sm:$0xff]   ;;  %v2241_v1 = vld [vmem:[#allocation10 + $0x58] sm:$0xff]  }
 0x10d   : > { %v2242_v2 = vld [vmem:[#allocation10 + $0x18] sm:$0xff]   ;;  %v2243_v3 = vld [vmem:[#allocation10 + $0x60] sm:$0xff]   ;;  %v2245_v8 = vld [vmem:[#allocation10 + $0x68] sm:$0xff]  }
 0x10e   : > { %1932 = vmatpush3.bf16.msra.mxu0 %v2204_v12  ;;  %1952 = vmatpush3.bf16.msra.mxu1 %v2221_v29  ;;  %v2244_v4 = vld [vmem:[#allocation10 + $0x20] sm:$0xff]   ;;  %v2246_v10 = vld [vmem:[#allocation10 + $0x28] sm:$0xff]   ;;  %v2247_v12 = vld [vmem:[#allocation10 + $0x70] sm:$0xff]  }
 0x10f   : > { %1933 = vmatprep.subr.bf16.mxu0 %v2205_v13  ;;  %1953 = vmatprep.subr.bf16.mxu1 %v2223_v31  ;;  %v2248_v13 = vld [vmem:[#allocation10 + $0x30] sm:$0xff]   ;;  %v2249_v14 = vld [vmem:[#allocation10 + $0x78] sm:$0xff]   ;;  %v2251_v16 = vld [vmem:[#allocation11 + $0x40] sm:$0xff]  }
 0x110   : > { %v2252_v17 = vld [vmem:[#allocation11] sm:$0xff]   ;;  %v2253_v18 = vld [vmem:[#allocation11 + $0x48] sm:$0xff]   ;;  %v2255_v20 = vld [vmem:[#allocation11 + $0x50] sm:$0xff]  }
 0x111   : > { %v2256_v21 = vld [vmem:[#allocation11 + $0x10] sm:$0xff]   ;;  %v2258_v23 = vld [vmem:[#allocation11 + $0x18] sm:$0xff]   ;;  %v2260_v25 = vld [vmem:[#allocation11 + $0x20] sm:$0xff]  }
 0x112   : > { %1934 = vmatpush3.bf16.msra.mxu0 %v2206_v15  ;;  %1954 = vmatpush3.bf16.msra.mxu1 %v2224_v33  ;;  %v2250_v15 = vld [vmem:[#allocation10 + $0x38] sm:$0xff]   ;;  %v1841_v27 = vld [vmem:[%s3173_s4] ss:$0 sm:$0xff]  ;;  %vm3065_vm4 = vmpackc.low %vm1128_vm3, %vm1128_vm3 }
 0x113   : > { %1935 = vmatprep.subr.bf16.mxu0 %v2207_v19  ;;  %1955 = vmatprep.subr.bf16.mxu1 %v2226_v39  ;;  %v2254_v19 = vld [vmem:[#allocation11 + $0x8] sm:$0xff]   ;;  %v1861_v29 = vld [vmem:[%s3225_s0] ss:$0 sm:$0xff] }
 0x114   : > { %v2263_v6 = vld [vmem:[#allocation11 + $0x70] sm:$0xff]  }
 0x116   : > { %1936 = vmatpush3.bf16.msra.mxu0 %v2208_v22  ;;  %1956 = vmatpush3.bf16.msra.mxu1 %v2227_v40  ;;  %v2257_v22 = vld [vmem:[#allocation11 + $0x58] sm:$0xff]  }
 0x117   : > { %1937 = vmatprep.subr.bf16.mxu0 %v2209_v24  ;;  %1957 = vmatprep.subr.bf16.mxu1 %v2229_v42  ;;  %v2259_v24 = vld [vmem:[#allocation11 + $0x60] sm:$0xff]  }
 0x11a   : > { %1938 = vmatpush3.bf16.msra.mxu0 %v2210_v28  ;;  %1958 = vmatpush3.bf16.msra.mxu1 %v2230_v43  ;;  %v2261_v43 = vld [vmem:[#allocation11 + $0x68] sm:$0xff]  }
 0x11b   : > { %2029 = vmatprep.subr.bf16.mxu0 %v2627_v34  ;;  %1959 = vmatprep.subr.bf16.mxu1 %v2232_v45  ;;  %v2264_v45 = vld [vmem:[#allocation11 + $0x30] sm:$0xff]  }
 0x11d   : > { %826 = vmatmul.mubr.bf16.vlgmr.msra.gmra.mrb[0].mxu0 %v656_v32 }
 0x11e   : > { %2030 = vmatpush3.bf16.msra.mxu0 %v2213_v30  ;;  %1960 = vmatpush3.bf16.msra.mxu1 %v2233_v46  ;;  %v2265_v46 = vld [vmem:[#allocation11 + $0x78] sm:$0xff]  }
 0x11f   : > { %2031 = vmatprep.subr.bf16.mxu0 %v2627_v34  ;;  %2045 = vmatprep.mubr.msk.bf16.mxu0 %vm2628_vm2, %v2627_v34 }
 0x120   : > { %1976 = vmatprep.subr.bf16.mxu1 %v2235_v48  ;;  %v2267_v48 = vld [vmem:[#allocation14] sm:$0xff]  }
 0x122   : > { %2032 = vmatpush3.bf16.msra.mxu0 %v2216_v35 }
 0x123   : > { %2033 = vmatprep.subr.bf16.mxu0 %v2627_v34 }
 0x126   : > { %2034 = vmatpush3.bf16.msra.mxu0 %v2219_v36 }
 0x127   : > { %2035 = vmatprep.subr.bf16.mxu0 %v2627_v34 }
 0x12a   : > { %2036 = vmatpush3.bf16.msra.mxu0 %v2222_v37 }
 0x12b   : > { %2037 = vmatprep.subr.bf16.mxu0 %v2627_v34 }
 0x12e   : > { %2038 = vmatpush3.bf16.msra.mxu0 %v2225_v38 }
 0x12f   : > { %2039 = vmatprep.subr.bf16.mxu0 %v2627_v34 }
 0x132   : > { %2040 = vmatpush3.bf16.msra.mxu0 %v2228_v41 }
 0x133   : > { %2041 = vmatprep.subr.bf16.mxu0 %v2627_v34 }
 0x136   : > { %2042 = vmatpush3.bf16.msra.mxu0 %v2231_v44  ;;  %v2262_v44 = vld [vmem:[#allocation11 + $0x28] sm:$0xff]  }
 0x137   : > { %2043 = vmatprep.subr.bf16.mxu0 %v2627_v34 }
 0x13a   : > { %2044 = vmatpush3.bf16.msra.mxu0 %v2234_v47  ;;  %v2266_v47 = vld [vmem:[#allocation11 + $0x38] sm:$0xff]  }
 0x13b   : > { %1998 = vmatprep.subr.bf16.mxu0 %v2251_v16 }
 0x13d   : > { %2046 = vmatmul.mubr.bf16.vlgmr.msra.gmra.mrb[4].mxu0 %v656_v32 }
 0x13e   : > { %1999 = vmatpush3.bf16.msra.mxu0 %v2252_v17 }
 0x13f   : > { %2000 = vmatprep.subr.bf16.mxu0 %v2253_v18 }
 0x142   : > { %2001 = vmatpush3.bf16.msra.mxu0 %v2254_v19 }
 0x143   : > { %2002 = vmatprep.subr.bf16.mxu0 %v2255_v20 }
 0x146   : > { %2003 = vmatpush3.bf16.msra.mxu0 %v2256_v21 }
 0x147   : > { %2004 = vmatprep.subr.bf16.mxu0 %v2257_v22 }
 0x14a   : > { %2005 = vmatpush3.bf16.msra.mxu0 %v2258_v23 }
 0x14b   : > { %2006 = vmatprep.subr.bf16.mxu0 %v2259_v24 }
 0x14e   : > { %2007 = vmatpush3.bf16.msra.mxu0 %v2260_v25 }
 0x14f   : > { %2008 = vmatprep.subr.bf16.mxu0 %v2261_v43 }
 0x152   : > { %2009 = vmatpush3.bf16.msra.mxu0 %v2262_v44 }
 0x153   : > { %2010 = vmatprep.subr.bf16.mxu0 %v2263_v6 }
 0x156   : > { %2011 = vmatpush3.bf16.msra.mxu0 %v2264_v45 }
 0x157   : > { %2012 = vmatprep.subr.bf16.mxu0 %v2265_v46 }
 0x15a   : > { %2013 = vmatpush3.bf16.msra.mxu0 %v2266_v47 }
 0x1f0   : > { %v1939_v49 = vpop.f32.mrb[0].mxu0 }
 0x1f1   : > { %v1940_v51 = vpop.f32.mrb[1].mxu0 }
 0x1f2   : > { %v1941_v52 = vadd.f32 %v1940_v51, %v1939_v49  ;;  %v1942_v53 = vpop.f32.mrb[2].mxu0  ;;  %v2268_v49 = vld [vmem:[#allocation14 + $0x8] sm:$0xff]   ;;  %v2270_v51 = vld [vmem:[#allocation14 + $0x18] sm:$0xff]  }
 0x1f3   : > { %v1943_v54 = vpop.f32.mrb[3].mxu0  ;;  %v1870_v53 = vld [vmem:[%s3228_s6] ss:$0 sm:$0xff]  ;;  %s1604_s6 = scalar_lea.sflag [#allocation4], %s3001_s1 }
 0x1f4   : > { %v828_v55 = vadd.f32 %v1941_v52, %v1821_v50  ;;  %v2269_v50 = vld [vmem:[#allocation14 + $0x10] sm:$0xff]  }
 0x1f6   : > { %v833_v56 = vmax.f32 %v828_v55, 0.0 }
 0x1f8   : > { %v834_v57 = vrot.slane %v833_v56, 7  ;;  %v836_v60 = vpack.c.bf16 %v833_v56, %v833_v56 }
 0x1fa   : > { %v1859_v58 = vpack.c.bf16 %v834_v57, %v834_v57 }
 0x1fc   : > { %1860 = vmatprep.mubr.msk.bf16.mxu1 %vm3032_vm1, %v1859_v58 }
 0x1fd   : > { %1006 = vmatmul.mubr.bf16.vlgmr.msra.gmra.mrb[0].mxu1 %v836_v60 }
 0x1fe   : > { %1977 = vmatpush3.bf16.msra.mxu1 %v2236_v59 }
 0x1ff   : > { %1978 = vmatprep.subr.bf16.mxu1 %v2237_v61 }
 0x202   : > { %1979 = vmatpush3.bf16.msra.mxu1 %v2238_v62 }
 0x203   : > { %1980 = vmatprep.subr.bf16.mxu1 %v2239_v63  ;;  %v2271_v63 = vld [vmem:[#allocation14 + $0x20] sm:$0xff]  }
 0x206   : > { %1981 = vmatpush3.bf16.msra.mxu1 %v2240_v0  ;;  %v2272_v0 = vld [vmem:[#allocation14 + $0x28] sm:$0xff]  }
 0x207   : > { %1982 = vmatprep.subr.bf16.mxu1 %v2241_v1  ;;  %v2273_v1 = vld [vmem:[#allocation14 + $0x30] sm:$0xff]  }
 0x20a   : > { %1983 = vmatpush3.bf16.msra.mxu1 %v2242_v2  ;;  %v2274_v2 = vld [vmem:[#allocation14 + $0x38] sm:$0xff]  }
 0x20b   : > { %1984 = vmatprep.subr.bf16.mxu1 %v2243_v3 }
 0x20e   : > { %1985 = vmatpush3.bf16.msra.mxu1 %v2244_v4  ;;  %v1890_v4 = vld [vmem:[%s3229_s20] ss:$0 sm:$0xff]  ;;  %s2507_s20 = scalar_lea.vmem %s2506_s16, 256 }
 0x20f   : > { %1986 = vmatprep.subr.bf16.mxu1 %v2245_v8  ;;  %p2509_p3 = scmp.lt.s32.totalorder %s2507_s20, %s2501_s14 }
 0x210   : > { %v1119_v5 = vpop.f32.mrb[4].mxu0 }
 0x211   : > { %v2047_v7 = vpop.f32.mrb[5].mxu0  ;;  %v1120_v35 = vadd.f32 %v1861_v29, %v1119_v5  ;;  %p2510_p6 = por %p2509_p3, %p2508_p2 }
 0x212   : > { %v1122_v9 = vpop.f32.mrb[6].mxu0  ;;  %1987 = vmatpush3.bf16.msra.mxu1 %v2246_v10 }
 0x213   : > { %v2048_v11 = vpop.f32.mrb[7].mxu0  ;;  %1988 = vmatprep.subr.bf16.mxu1 %v2247_v12  ;;  %p2511_p10 = pnand %p2510_p6, %p2504_p0 }
 0x216   : > { %1989 = vmatpush3.bf16.msra.mxu1 %v2248_v13 }
 0x217   : > { %1990 = vmatprep.subr.bf16.mxu1 %v2249_v14 }
 0x21a   : > { %1991 = vmatpush3.bf16.msra.mxu1 %v2250_v15 }
 0x21b   : > { %2049 = vmatprep.subr.bf16.mxu1 %v2627_v34 }
 0x2d0   : > { %v1961_v26 = vpop.f32.mrb[0].mxu1 }
 0x2d1   : > { %v1962_v28 = vpop.f32.mrb[1].mxu1 }
 0x2d2   : > { %v1963_v30 = vadd.f32 %v1962_v28, %v1961_v26  ;;  %v1964_v31 = vpop.f32.mrb[2].mxu1 }
 0x2d3   : > { %v1965_v32 = vpop.f32.mrb[3].mxu1 }
 0x2d4   : > { %v1008_v33 = vadd.f32 %v1963_v30, %v1841_v27 }
 0x2d6   : > { %v1013_v36 = vmax.f32 %v1008_v33, 0.0 }
 0x2d8   : > { %v1125_v37 = vadd.f32 %v1120_v35, %v1013_v36 }
 0x2da   : > { %v3061_v38 = vmax.f32 %v1125_v37, 0.0 }
 0x2dc   : > { %v1127_v39 = vrot.slane %v3061_v38, 6  ;;  %v1130_v42 = vpack.c.bf16 %v3061_v38, %v3061_v38 }
 0x2de   : > { %v1888_v41 = vpack.c.bf16 %v1127_v39, %v1127_v39 }
 0x2e0   : > { %1889 = vmatprep.mubr.msk.bf16.mxu1 %vm3065_vm4, %v1888_v41 }
 0x2e1   : > { %1300 = vmatmul.mubr.bf16.vlgmr.msra.gmra.mrb[4].mxu1 %v1130_v42 }
 0x2e2   : > { %2065 = vmatprep.mubr.msk.bf16.mxu1 %vm2628_vm2, %v2627_v34  ;;  %2050 = vmatpush3.bf16.msra.mxu1 %v2267_v48 }
 0x2e3   : > { %2051 = vmatprep.subr.bf16.mxu1 %v2627_v34 }
 0x2e6   : > { %2052 = vmatpush3.bf16.msra.mxu1 %v2268_v49 }
 0x2e7   : > { %2053 = vmatprep.subr.bf16.mxu1 %v2627_v34 }
 0x2ea   : > { %2054 = vmatpush3.bf16.msra.mxu1 %v2269_v50 }
 0x2eb   : > { %2055 = vmatprep.subr.bf16.mxu1 %v2627_v34 }
 0x2ee   : > { %2056 = vmatpush3.bf16.msra.mxu1 %v2270_v51 }
 0x2ef   : > { %2057 = vmatprep.subr.bf16.mxu1 %v2627_v34 }
 0x2f2   : > { %2058 = vmatpush3.bf16.msra.mxu1 %v2271_v63 }
 0x2f3   : > { %2059 = vmatprep.subr.bf16.mxu1 %v2627_v34 }
 0x2f6   : > { %2060 = vmatpush3.bf16.msra.mxu1 %v2272_v0 }
 0x2f7   : > { %2061 = vmatprep.subr.bf16.mxu1 %v2627_v34 }
 0x2fa   : > { %2062 = vmatpush3.bf16.msra.mxu1 %v2273_v1 }
 0x2fb   : > { %2063 = vmatprep.subr.bf16.mxu1 %v2627_v34 }
 0x2fe   : > { %2064 = vmatpush3.bf16.msra.mxu1 %v2274_v2 }
 0x3b4   : > { %v1992_v52 = vpop.f32.mrb[4].mxu1 }
 0x3b5   : > { %v1993_v54 = vpop.f32.mrb[5].mxu1 }
 0x3b6   : > { %v1994_v55 = vadd.f32 %v1993_v54, %v1992_v52  ;;  %v1995_v56 = vpop.f32.mrb[6].mxu1 }
 0x3b7   : > { %v1996_v57 = vpop.f32.mrb[7].mxu1 }
 0x3b8   : > { %v1302_v58 = vadd.f32 %v1994_v55, %v1870_v53 }
 0x3ba   : > { %v1307_v59 = vmax.f32 %v1302_v58, 0.0 }
 0x3bc   : > { %v1308_v60 = vrot.slane %v1307_v59, 6  ;;  %v1310_v62 = vpack.c.bf16 %v1307_v59, %v1307_v59 }
 0x3be   : > { %v1908_v61 = vpack.c.bf16 %v1308_v60, %v1308_v60 }
 0x3c0   : > { %1909 = vmatprep.mubr.msk.bf16.mxu0 %vm3065_vm4, %v1908_v61 }
 0x3c1   : > { %1480 = vmatmul.mubr.bf16.vlgmr.msra.gmra.mrb[8].mxu0 %v1310_v62 }
 0x494   : > { %v2014_v3 = vpop.f32.mrb[8].mxu0 }
 0x495   : > { %v2015_v5 = vpop.f32.mrb[9].mxu0 }
 0x496   : > { %v2016_v7 = vadd.f32 %v2015_v5, %v2014_v3  ;;  %v2017_v8 = vpop.f32.mrb[10].mxu0 }
 0x497   : > { %v2018_v9 = vpop.f32.mrb[11].mxu0 }
 0x498   : > { %v1482_v10 = vadd.f32 %v2016_v7, %v1890_v4 }
 0x49a   : > { %v1487_v11 = vmax.f32 %v1482_v10, 0.0 }
 0x49c   : > { %v1488_v12 = vadd.f32 %v1487_v11, %v3061_v38 }
 0x49e   : > { %v1489_v13 = vmax.f32 %v1488_v12, 0.0 }
 0x4a0   : > { %v1491_v34 = vpack.c.bf16 %v1489_v13, %v1489_v13  ;;  %1490 = vst [vmem:[%s642_s10] sm:$0xff] %v1489_v13 }
 0x4a2   : > { %v1510_v14 = vshrl.u32 %v1491_v34, 16 }
 0x4a4   : > { %v1512_v15 = vrot.slane %v1510_v14, 3 }
 0x4a6   : > { %2066 = vmatmul.mubr.bf16.vlgmr.msra.gmra.mrb[8].mxu1 %v1512_v15 }
 0x4a7   : > { %2514 = shalt.err (!%p2511_p10)
}
 0x4a8   : > { %s2515_s10 = scalar_lea.hbm %s3097_s29, 128  ;;  %s2519_s0 = scalar_lea.hbm %s3230_s24, 256 }
 0x4a9   : > { %p2516_p11 = scmp.ne.s32.totalorder %s3097_s29, %s2515_s10  ;;  %p2520_p9 = scmp.lt.u32.totalorder %s3097_s29, %s3230_s24 }
 0x4aa   : > { %p2521_p7 = scmp.lt.u32.totalorder %s2519_s0, %s2515_s10  ;;  %p2523_p12 = scmp.lt.u32.totalorder %s2515_s10, %s3097_s29 }
 0x4ab   : > { %p2517_p8 = pnand %p2516_p11, %p3231_p1 }
 0x4ac   : > { %p2522_p4 = por %p2521_p7, %p2520_p9 }
 0x4ad   : > { %p2518_p5 = pneg %p2517_p8 }
 0x4ae   : > { %p2524_p13 = por %p2523_p12, %p2522_p4 }
 0x4b0   : > { %p2525_p0 = pnand %p2524_p13, %p2518_p5 }
 0x4b2   : > { %2528 = shalt.err (!%p2525_p0)
}
 0x4b3   : > { %2099 = dma.vmem_to_hbm [thread:$0]  (%p3231_p1), %s1622_s30, 128, %s3097_s29, %s1604_s6  }
 0x4b4   : > { %s3232_s19 = sld [smem:[#allocation33_spill]]  ;;  %s1920_s17 = sshll.u32 %s2737_s26, 4 }
 0x4b5   : > { %s648_s27 = scalar_lea.vmem [#allocation17], %s3001_s1  ;;  %s3233_s2 = sld [smem:[#allocation35_spill]] }
 0x4b6   : > { %s1634_s0 = sshll.u32 %s648_s27, 4  ;;  %s1609_s30 = scalar_lea.sflag [#allocation18], %s3001_s1  ;;  %s3127_s0 = int_to_ptr.vmem [resolvable:$true] %s1634_s0 }
 0x4b7   : > { %s2529_s26 = scalar_lea.vmem %s3127_s0, 16  ;;  %s2630_s29 = smov [#allocation17]  }
 0x4b8   : > { %p2530_p2 = scmp.ne.s32.totalorder %s3127_s0, %s2529_s26  ;;  %s2533_s6 = sshll.u32 %s2630_s29, 4  ;;  %s2534_s6 = int_to_ptr.vmem [resolvable:$false] %s2533_s6 }
 0x4b9   : > { %s2535_s14 = scalar_lea.vmem %s2534_s6, 32  ;;  %p2536_p10 = scmp.lt.s32.totalorder %s3127_s0, %s2534_s6 }
 0x4ba   : > { %v1508_v16 = vld [vmem:[%s3232_s19] sm:$0x1]  ;;  %p2531_p3 = pnand %p2530_p2, %p3231_p1  ;;  %p2537_p11 = scmp.lt.s32.totalorder %s2535_s14, %s2529_s26 }
 0x4bb   : > { %s3125_s3 = scalar_lea.hbm %s3233_s2, %s1920_s17 }
 0x4bc   : > { %p2532_p6 = pneg %p2531_p3  ;;  %p2538_p8 = por %p2537_p11, %p2536_p10 }
 0x4be   : > { %p2539_p5 = pnand %p2538_p8, %p2532_p6 }
 0x579   : > { %v1596_v17 = vpop.f32.mrb[8].mxu1 }
 0x57a   : > { %v1597_v18 = vadd.f32 %v1596_v17, %v1508_v16  ;;  %v2067_v19 = vpop.f32.mrb[9].mxu1 }
 0x57b   : > { %v1599_v20 = vpop.f32.mrb[10].mxu1 }
 0x57c   : > { %1602 = vst [vmem:[%s648_s27] sm:$0x1] %v1597_v18  ;;  %v2068_v21 = vpop.f32.mrb[11].mxu1 }
 0x57d   : > { %2542 = shalt.err (!%p2539_p5)
}
 0x57e   : > { %s2543_s1 = scalar_lea.hbm %s3125_s3, 16  ;;  %s2547_s17 = scalar_lea.hbm %s3233_s2, 32 }
 0x57f   : > { %p2544_p9 = scmp.ne.s32.totalorder %s3125_s3, %s2543_s1  ;;  %p2548_p12 = scmp.lt.u32.totalorder %s3125_s3, %s3233_s2 }
 0x580   : > { %p2549_p13 = scmp.lt.u32.totalorder %s2547_s17, %s2543_s1  ;;  %p2551_p2 = scmp.lt.u32.totalorder %s2543_s1, %s3125_s3 }
 0x581   : > { %p2545_p7 = pnand %p2544_p9, %p3231_p1 }
 0x582   : > { %p2550_p0 = por %p2549_p13, %p2548_p12 }
 0x583   : > { %p2546_p4 = pneg %p2545_p7 }
 0x584   : > { %p2552_p3 = por %p2551_p2, %p2550_p0 }
 0x586   : > { %p2553_p6 = pnand %p2552_p3, %p2546_p4 }
 0x588   : > { %2556 = shalt.err (!%p2553_p6)
}
 0x589   : > { %2100 = dma.vmem_to_hbm [thread:$0]  (%p3231_p1), %s3127_s0, 16, %s3125_s3, %s1609_s30  }
 0x58a PF: > { %s1646_s16 = sand.u32 1, %s2603_s12   ;;  %p3234_p10 = scmp.ne.s32.totalorder %s3210_s15, 0 }
 0x58b   : > { %p3235_p11 = scmp.ge.s32.totalorder %s2615_s23, 2  ;;  %s1647_s26 = scalar_lea.sflag [#allocation4], %s1646_s16 }
 0x58d   : > { %p2130_p8 = pnand %p3235_p11, %p3234_p10 }
 0x58f   : > { %2594 = dma.done.wait (!%p2130_p8), %s1647_s26, 128  }
 0x590   : > { %2596 = vsyncadd (!%p2130_p8), %s1647_s26, 4294967168  ;;  %s1656_s29 = scalar_lea.sflag [#allocation18], %s1646_s16 }
 0x591   : > { %2598 = dma.done.wait (!%p2130_p8), %s1656_s29, 16  }
 0x592   : > { %2600 = vsyncadd (!%p2130_p8), %s1656_s29, 4294967280  ;;  %p37_p1 = scmp.ge.s32.totalorder %s2931_s28, 4   ;;  %s3236_s12 = smov %s2607_s21 }
 0x593   : > { %s3237_s21 = smov %s2611_s22  ;;  %s3238_s22 = smov %s2943_s8 }
 0x594   : > { %s3239_s23 = smov %s2931_s28  ;;  %39 = sbr.rel (!%p37_p1) target bundleno = 22 (0x16), region = 170 }
 0x59b   :  { %1660 = vsyncpa [#allocation3], 1 }
 0x59c   :  { %1662 = vsyncpa [#allocation3 + $0x1], 1 }
 0x59d   :  { %1663 = vsyncpa [#allocation6], 1 }
 0x59e   :  { %1664 = vsyncpa [#allocation9], 1 }
 0x59f   :  { %1665 = vsyncpa [#allocation12], 1 }
 0x5a0   :  { %1666 = vsyncpa [#allocation15], 1 }
 0x5a1   :  { %1667 = vsyncpa [#allocation4], 1 }
 0x5a2   :  { %1669 = vsyncpa [#allocation4 + $0x1], 1 }
 0x5a3   :  { %1670 = vsyncpa [#allocation18], 1 }
 0x5a4   :  { %1672 = vsyncpa [#allocation18 + $0x1], 1 }

</bundles_post_ra>
